<compile_context>
chip_gen: v5e
topology: v5e:2x2
jax: 0.10.0
libtpu: 0.0.40
codegen_flags: <defaults>
</compile_context>

<pallas_src>
import functools

import jax
import jax.numpy as jnp
from jax import lax
from jax.experimental import pallas as pl
from jax.experimental.pallas import tpu as pltpu

EPS = 1e-6

# splitmix-style hash constants (all < 2**31 so they are valid int32 literals).
_SEED_MIX = 0x3243F6A9
_PHI = 0x61C88647
_C1 = 0x7FEB352D
_C2 = 0x2545F491


def _hash_bits24(gid, seed):
    """Counter-based hash of (global element id, seed) -> int32 in [0, 2**24)."""
    h = gid + seed * jnp.int32(_SEED_MIX)
    h = h * jnp.int32(_PHI)
    h = jnp.bitwise_xor(h, lax.shift_right_logical(h, 16))
    h = h * jnp.int32(_C1)
    h = jnp.bitwise_xor(h, lax.shift_right_logical(h, 15))
    h = h * jnp.int32(_C2)
    h = jnp.bitwise_xor(h, lax.shift_right_logical(h, 16))
    return lax.shift_right_logical(h, 8)  # uniform in [0, 2**24)


def sublayer_connection_kernel(seed_ref, x_ref, w_ref, params_ref, o_ref, *,
                               hidden, tm, p):
    x = x_ref[...].astype(jnp.float32)                       # (TM, H)
    gamma = params_ref[0:1, :]                                # (1, H)
    beta = params_ref[1:2, :]                                 # (1, H)
    bias = params_ref[2:3, :]                                 # (1, H)

    # ---- LayerNorm (unbiased std, eps added to std, affine a_2/b_2) ----
    mean = jnp.mean(x, axis=-1, keepdims=True)
    d = x - mean
    var_unbiased = jnp.sum(d * d, axis=-1, keepdims=True) * (1.0 / (hidden - 1))
    inv_std = 1.0 / (jnp.sqrt(var_unbiased) + EPS)            # (TM, 1), cheap
    y = gamma * (d * inv_std) + beta

    # ---- sublayer: Linear(H, H) on the MXU, bf16 inputs / f32 accumulate ----
    z = jnp.dot(y.astype(jnp.bfloat16), w_ref[...],
                preferred_element_type=jnp.float32) + bias

    # ---- dropout (train-mode, inverted scaling), deterministic hash PRNG ----
    # TODO(synk): PyTorch's nn.Dropout RNG stream is not reproducible here; a
    # counter-based hash keyed on (seed, element index) is used instead.
    if p > 0.0:
        row = lax.broadcasted_iota(jnp.int32, (tm, hidden), 0)
        col = lax.broadcasted_iota(jnp.int32, (tm, hidden), 1)
        gid = (pl.program_id(0) * tm + row) * hidden + col
        bits24 = _hash_bits24(gid, seed_ref[0])
        thresh = jnp.int32(int(p * (1 << 24)))
        keep = bits24 >= thresh
        z = jnp.where(keep, z * (1.0 / (1.0 - p)), 0.0)

    # ---- residual connection ----
    o_ref[...] = (x + z).astype(o_ref.dtype)


def _pick_row_tile(m):
    for cand in (1024, 512, 256, 128, 64, 32, 16, 8):
        if m % cand == 0:
            return cand
    return m  # tiny / odd M: one full-extent block


def sublayer_connection(x, w, b, gamma, beta, seed, *, p):
    """x: (B, S, H) f32. Returns x + dropout(Linear(LayerNorm(x)))."""
    B, S, H = x.shape
    M = B * S
    TM = _pick_row_tile(M)

    x2 = x.reshape(M, H)
    w_bf16 = w.astype(jnp.bfloat16)                       # resident weight, half VMEM
    params = jnp.stack([gamma, beta, b]).astype(jnp.float32)   # (3, H) fused params

    kernel = functools.partial(sublayer_connection_kernel, hidden=H, tm=TM, p=p)

    cost = pl.CostEstimate(
        flops=2 * M * H * H + 12 * M * H,
        transcendentals=M,                                # per-row sqrt
        bytes_accessed=2 * M * H * 4 + H * H * 2 + 3 * H * 4,
    )

    out = pl.pallas_call(
        kernel,
        out_shape=jax.ShapeDtypeStruct((M, H), x.dtype),
        grid_spec=pltpu.PrefetchScalarGridSpec(
            num_scalar_prefetch=1,                        # seed lives in SMEM
            grid=(M // TM,),
            in_specs=[
                pl.BlockSpec((TM, H), lambda i, seed: (i, 0)),   # x rows
                pl.BlockSpec((H, H), lambda i, seed: (0, 0)),    # W (resident, bf16)
                pl.BlockSpec((3, H), lambda i, seed: (0, 0)),    # gamma/beta/bias
            ],
            out_specs=pl.BlockSpec((TM, H), lambda i, seed: (i, 0)),
        ),
        compiler_params=pltpu.CompilerParams(
            dimension_semantics=("parallel",),            # rows independent -> megacore
            vmem_limit_bytes=64 * 1024 * 1024),
        cost_estimate=cost,
    )(seed, x2, w_bf16, params)
    return out.reshape(B, S, H)


def _reference_no_dropout(x, w, b, gamma, beta):
    mean = jnp.mean(x, axis=-1, keepdims=True)
    d = x - mean
    var_unbiased = jnp.sum(d * d, axis=-1, keepdims=True) / (x.shape[-1] - 1)
    std = jnp.sqrt(var_unbiased)
    y = gamma * d / (std + EPS) + beta
    z = jnp.einsum("bsh,hk->bsk", y, w) + b
    return x + z


if __name__ == "__main__":
    B, S, H = 2, 64, 128
    dropout_p = 0.1

    key = jax.random.PRNGKey(0)
    kx, kw, kb = jax.random.split(key, 3)
    x = jax.random.normal(kx, (B, S, H), dtype=jnp.float32)

    # Deterministic parameter init.
    # LayerNorm: a_2 = ones, b_2 = zeros (as in the module's __init__).
    gamma = jnp.ones((H,), dtype=jnp.float32)
    beta = jnp.zeros((H,), dtype=jnp.float32)
    # Sublayer (Linear H->H) weights.
    w = jax.random.normal(kw, (H, H), dtype=jnp.float32) * 0.02
    b = jax.random.normal(kb, (H,), dtype=jnp.float32) * 0.02

    seed = jnp.array([0], dtype=jnp.int32)

    # Eval-mode check (dropout off) against a pure-f32 JAX reference.
    # Tolerance accounts for the bf16 MXU inputs in the kernel.
    out_nodrop = sublayer_connection(x, w, b, gamma, beta, seed, p=0.0)
    jax.block_until_ready(out_nodrop)
    ref = _reference_no_dropout(x, w, b, gamma, beta)
    assert jnp.allclose(out_nodrop, ref, atol=2e-2, rtol=2e-2), float(
        jnp.max(jnp.abs(out_nodrop - ref)))

    # Train-mode forward (dropout active, deterministic hash-PRNG seed).
    out = sublayer_connection(x, w, b, gamma, beta, seed, p=dropout_p)
    jax.block_until_ready(out)
    assert out.shape == (B, S, H)
    assert bool(jnp.all(jnp.isfinite(out)))

    print("KERNEL_OK")
</pallas_src>

<mosaic_0001>
module attributes {stable_mosaic.version = 11 : i64} {
  func.func @sublayer_connection_kernel(%arg0: i32, %arg1: memref<1xi32, #tpu.memory_space<smem>>, %arg2: memref<128x128xf32, #tpu.memory_space<vmem>>, %arg3: memref<128x128xbf16, #tpu.memory_space<vmem>>, %arg4: memref<3x128xf32, #tpu.memory_space<vmem>>, %arg5: memref<128x128xf32, #tpu.memory_space<vmem>>) attributes {dimension_semantics = [#tpu.dimension_semantics<parallel>], iteration_bounds = array<i64: 1>, scalar_prefetch = 1 : i64, scratch_operands = 0 : i64, tpu.core_type = #tpu.core_type<tc>, window_params = [{transform_indices = @transform_0, window_bounds = array<i64: 128, 128>}, {pipeline_mode = #tpu.pipeline_mode<synchronous>, transform_indices = @transform_1, window_bounds = array<i64: 128, 128>}, {pipeline_mode = #tpu.pipeline_mode<synchronous>, transform_indices = @transform_2, window_bounds = array<i64: 3, 128>}, {transform_indices = @transform_3, window_bounds = array<i64: 128, 128>}]} {
    %c0 = arith.constant 0 : index
    %c0_0 = arith.constant 0 : index
    %0 = vector.load %arg2[%c0, %c0_0] : memref<128x128xf32, #tpu.memory_space<vmem>>, vector<128x128xf32>
    %c0_1 = arith.constant 0 : index
    %c0_2 = arith.constant 0 : index
    %1 = vector.load %arg4[%c0_1, %c0_2] : memref<3x128xf32, #tpu.memory_space<vmem>>, vector<1x128xf32>
    %c1 = arith.constant 1 : index
    %c0_3 = arith.constant 0 : index
    %2 = vector.load %arg4[%c1, %c0_3] : memref<3x128xf32, #tpu.memory_space<vmem>>, vector<1x128xf32>
    %c2 = arith.constant 2 : index
    %c0_4 = arith.constant 0 : index
    %3 = vector.load %arg4[%c2, %c0_4] : memref<3x128xf32, #tpu.memory_space<vmem>>, vector<1x128xf32>
    %cst = arith.constant dense<0.000000e+00> : vector<128xf32>
    %4 = vector.multi_reduction <add>, %0, %cst [1] : vector<128x128xf32> to vector<128xf32>
    %5 = vector.shape_cast %4 : vector<128xf32> to vector<128x1xf32>
    %cst_5 = arith.constant 1.280000e+02 : f32
    %6 = vector.broadcast %cst_5 : f32 to vector<128x1xf32>
    %7 = arith.divf %5, %6 : vector<128x1xf32>
    %8 = vector.broadcast %7 : vector<128x1xf32> to vector<128x128xf32>
    %9 = arith.subf %0, %8 : vector<128x128xf32>
    %10 = arith.mulf %9, %9 : vector<128x128xf32>
    %cst_6 = arith.constant dense<0.000000e+00> : vector<128xf32>
    %11 = vector.multi_reduction <add>, %10, %cst_6 [1] : vector<128x128xf32> to vector<128xf32>
    %12 = vector.shape_cast %11 : vector<128xf32> to vector<128x1xf32>
    %cst_7 = arith.constant 0.00787401571 : f32
    %13 = vector.broadcast %cst_7 : f32 to vector<128x1xf32>
    %14 = arith.mulf %12, %13 : vector<128x1xf32>
    %15 = math.sqrt %14 : vector<128x1xf32>
    %cst_8 = arith.constant 9.99999997E-7 : f32
    %16 = vector.broadcast %cst_8 : f32 to vector<128x1xf32>
    %17 = arith.addf %15, %16 : vector<128x1xf32>
    %cst_9 = arith.constant 1.000000e+00 : f32
    %18 = vector.broadcast %cst_9 : f32 to vector<128x1xf32>
    %19 = arith.divf %18, %17 : vector<128x1xf32>
    %20 = vector.broadcast %19 : vector<128x1xf32> to vector<128x128xf32>
    %21 = arith.mulf %9, %20 : vector<128x128xf32>
    %22 = vector.broadcast %1 : vector<1x128xf32> to vector<128x128xf32>
    %23 = arith.mulf %22, %21 : vector<128x128xf32>
    %24 = vector.broadcast %2 : vector<1x128xf32> to vector<128x128xf32>
    %25 = arith.addf %23, %24 : vector<128x128xf32>
    %26 = arith.truncf %25 : vector<128x128xf32> to vector<128x128xbf16>
    %c0_10 = arith.constant 0 : index
    %c0_11 = arith.constant 0 : index
    %27 = vector.load %arg3[%c0_10, %c0_11] : memref<128x128xbf16, #tpu.memory_space<vmem>>, vector<128x128xbf16>
    %cst_12 = arith.constant dense<0.000000e+00> : vector<128x128xf32>
    %28 = tpu.matmul %26, %27, %cst_12 {dimension_numbers = #tpu.dot_dimension_numbers<[1], [0], [0], [1], [0, 0, 1, 1], [], []>} : vector<128x128xbf16>, vector<128x128xbf16>, vector<128x128xf32> -> vector<128x128xf32>
    %29 = vector.broadcast %3 : vector<1x128xf32> to vector<128x128xf32>
    %30 = arith.addf %28, %29 : vector<128x128xf32>
    %31 = arith.addf %0, %30 : vector<128x128xf32>
    %c0_13 = arith.constant 0 : index
    %c0_14 = arith.constant 0 : index
    %32 = vector.load %arg5[%c0_13, %c0_14] : memref<128x128xf32, #tpu.memory_space<vmem>>, vector<128x128xf32>
    tpu.vector_store %arg5[%c0_13, %c0_14], %31 {strides = array<i32>} : memref<128x128xf32, #tpu.memory_space<vmem>>, vector<128x128xf32>,
    return
  }
  func.func @transform_0(%arg0: i32, %arg1: memref<1xi32, #tpu.memory_space<smem>>) -> (i32, i32) {
    %c0_i32 = arith.constant 0 : i32
    %c0_i32_0 = arith.constant 0 : i32
    return %arg0, %c0_i32 : i32, i32
  }
  func.func @transform_1(%arg0: i32, %arg1: memref<1xi32, #tpu.memory_space<smem>>) -> (i32, i32) {
    %c0_i32 = arith.constant 0 : i32
    %c0_i32_0 = arith.constant 0 : i32
    %c0_i32_1 = arith.constant 0 : i32
    return %c0_i32, %c0_i32_0 : i32, i32
  }
  func.func @transform_2(%arg0: i32, %arg1: memref<1xi32, #tpu.memory_space<smem>>) -> (i32, i32) {
    %c0_i32 = arith.constant 0 : i32
    %c0_i32_0 = arith.constant 0 : i32
    %c0_i32_1 = arith.constant 0 : i32
    return %c0_i32, %c0_i32_0 : i32, i32
  }
  func.func @transform_3(%arg0: i32, %arg1: memref<1xi32, #tpu.memory_space<smem>>) -> (i32, i32) {
    %c0_i32 = arith.constant 0 : i32
    %c0_i32_0 = arith.constant 0 : i32
    return %arg0, %c0_i32 : i32, i32
  }
}

</mosaic_0001>

<bundles_post_ra>
// kernel: tpu_custom_call.1
= control target key start
LH: loop header
LB: loop body
LE: loop exit
PB: predicated region body
PF: predicated region fallthrough
CT: control target
= control target key end

     0   :  { %10 = vsyncpa [#allocation5], 0  ;;  %s1906_s0 = inlined_call_operand.<no memory space> [shape: s32[1], index: 0, kind: input, shape index: {}]   ;;  %s1907_s1 = inlined_call_operand.hbm [shape: f32[128,128], index: 1, kind: input, shape index: {}]   ;;  %s1908_s2 = inlined_call_operand.hbm [shape: bf16[128,128], index: 2, kind: input, shape index: {}]   ;;  %s1909_s3 = inlined_call_operand.hbm [shape: f32[3,128], index: 3, kind: input, shape index: {}]   ;;  %s1910_s4 = inlined_call_operand.hbm [shape: f32[128,128], index: 4, kind: output, shape index: {}]  }
   0x1   :  { %11 = vsyncpa [#allocation8], 0  ;;  %s30_s17 = sshll.u32 %s1908_s2, 4  ;;  %s31_s17 = int_to_ptr.hbm [resolvable:$true] %s30_s17 }
   0x2   :  { %12 = vsyncpa [#allocation6], 0  ;;  %s1148_s0 = smov [#allocation7]   ;;  %s17_s21 = sshll.u32 %s1907_s1, 4  ;;  %s18_s21 = int_to_ptr.hbm [resolvable:$true] %s17_s21 }
   0x3   :  { %s32_s18 = sshll.u32 %s1148_s0, 4  ;;  %s1149_s22 = smov 64   ;;  %s33_s18 = int_to_ptr.vmem [resolvable:$true] %s32_s18 }
   0x4   :  { %s1150_s23 = smov 4   ;;  %s1151_s24 = smov [#allocation4]  }
   0x5   :  { %38 = dma.hbm_to_vmem [thread:$0]  %s31_s17, 1024, %s33_s18, [#allocation8], %s1149_s22, %s1149_s22, %s1150_s23  }
   0x6   :  { %s19_s25 = sshll.u32 %s1151_s24, 4  ;;  %s1152_s26 = smov 128   ;;  %s20_s25 = int_to_ptr.vmem [resolvable:$true] %s19_s25 }
   0x7   :  { %s1153_s27 = smov 8   ;;  %s44_s29 = sshll.u32 %s1909_s3, 4  ;;  %s45_s29 = int_to_ptr.hbm [resolvable:$true] %s44_s29 }
   0x8   :  { %25 = dma.hbm_to_vmem [thread:$0]  %s18_s21, 2048, %s20_s25, [#allocation5], %s1152_s26, %s1152_s26, %s1153_s27  }
   0x9   :  { %s1154_s30 = smov [#allocation9]  }
   0xa   :  { %s46_s1 = sshll.u32 %s1154_s30, 4  ;;  %s47_s1 = int_to_ptr.vmem [resolvable:$true] %s46_s1 }
   0xb   :  { %49 = dma.hbm_to_vmem [thread:$0]  %s45_s29, 64, %s47_s1, [#allocation8]  }
   0xc   :  { %1142 = dma.done.wait [#allocation5], 2048  }
   0xd   :  { %1143 = vsyncadd [#allocation5], 4294965248 }
   0xe   :  { %1144 = dma.done.wait [#allocation8], 1088  }
   0xf   :  { %1145 = vsyncadd [#allocation8], 4294966208  ;;  %v74_v0 = vld [vmem:[#allocation4 + $0x60] sm:$0xff]  ;;  %v75_v3 = vld [vmem:[#allocation4 + $0x68] sm:$0xff]  ;;  %v1155_v16 = vmov 128.0   ;;  %s1156_s3 = smov [#allocation10]  }
  0x10   :  { %v70_v1 = vld [vmem:[#allocation4 + $0x40] sm:$0xff]  ;;  %105 = vadd.xlane.f32.xlu1 %v74_v0  ;;  %v71_v4 = vld [vmem:[#allocation4 + $0x48] sm:$0xff]  ;;  %v72_v8 = vld [vmem:[#allocation4 + $0x50] sm:$0xff]  ;;  %964 = vrcp.f32 %v1155_v16  ;;  %s872_s5 = sshll.u32 %s1156_s3, 4  ;;  %s874_s8 = sshll.u32 %s1910_s4, 4  ;;  %s873_s5 = int_to_ptr.vmem [resolvable:$true] %s872_s5  ;;  %s875_s8 = int_to_ptr.hbm [resolvable:$true] %s874_s8 }
  0x11   :  { %v1194_v2 = vld [vmem:[#allocation4] sm:$0xff]  ;;  %97 = vadd.xlane.f32.xlu0 %v70_v1  ;;  %v63_v5 = vld [vmem:[#allocation4 + $0x8] sm:$0xff]  ;;  %v1200_v9 = vld [vmem:[#allocation4 + $0x58] sm:$0xff] }
  0x12   :  { %81 = vadd.xlane.f32.xlu2 %v1194_v2  ;;  %v66_v6 = vld [vmem:[#allocation4 + $0x20] sm:$0xff]  ;;  %v1197_v7 = vld [vmem:[#allocation4 + $0x28] sm:$0xff]  ;;  %v1202_v10 = vld [vmem:[#allocation4 + $0x70] sm:$0xff] }
  0x13   :  { %v1204_v11 = vld [vmem:[#allocation4 + $0x78] sm:$0xff]  ;;  %v1209_v12 = vld [vmem:[#allocation4 + $0x10] sm:$0xff] }
  0x14   :  { %v1211_v13 = vld [vmem:[#allocation4 + $0x18] sm:$0xff]  ;;  %v1213_v14 = vld [vmem:[#allocation4 + $0x30] sm:$0xff] }
  0x15   :  { %v1218_v15 = vld [vmem:[#allocation4 + $0x38] sm:$0xff] }
  0x16   :  { %v965_v17 = vpop.eup %964 }
  0x17   :  { %v114_v18 = vmul.f32 128.0, %v965_v17  ;;  %vm118_vm0 = vweird.f32 %v965_v17 }
  0x18   :  { %107 = vadd.xlane.f32.xlu1 %v75_v3 }
  0x19   :  { %99 = vadd.xlane.f32.xlu0 %v71_v4  ;;  %v115_v19 = vsub.f32 1.0, %v114_v18 }
  0x1a   :  { %83 = vadd.xlane.f32.xlu2 %v63_v5 }
  0x1b   :  { %v116_v20 = vmul.f32 %v965_v17, %v115_v19 }
  0x1d   :  { %v117_v21 = vadd.f32 %v965_v17, %v116_v20 }
  0x1f   :  { %v1221_v22 = vsel %vm118_vm0, %v965_v17, %v117_v21 }
  0x20   :  { %91 = vadd.xlane.f32.xlu1 %v1197_v7 }
  0x21   :  { %89 = vadd.xlane.f32.xlu0 %v66_v6 }
  0x22   :  { %101 = vadd.xlane.f32.xlu2 %v72_v8 }
  0x28   :  { %109 = vadd.xlane.f32.xlu1 %v1202_v10 }
  0x29   :  { %103 = vadd.xlane.f32.xlu0 %v1200_v9 }
  0x2a   :  { %111 = vadd.xlane.f32.xlu2 %v1204_v11 }
  0x30   :  { %87 = vadd.xlane.f32.xlu1 %v1211_v13 }
  0x31   :  { %85 = vadd.xlane.f32.xlu0 %v1209_v12 }
  0x32   :  { %93 = vadd.xlane.f32.xlu2 %v1213_v14 }
  0x39   :  { %95 = vadd.xlane.f32.xlu0 %v1218_v15 }
  0x83   :  { %v106_v23 = vpop.xlane.xlu1 %105 }
  0x84   :  { %v98_v24 = vpop.xlane.xlu0 %97  ;;  %v132_v25 = vmul.f32 %v1221_v22, %v106_v23 }
  0x85   :  { %v128_v26 = vmul.f32 %v1221_v22, %v98_v24  ;;  %v82_v27 = vpop.xlane.xlu2 %81 }
  0x86   :  { %v1225_v28 = vsub.f32 %v74_v0, %v132_v25  ;;  %v120_v41 = vmul.f32 %v1221_v22, %v82_v27 }
  0x87   :  { %v1227_v29 = vsub.f32 %v70_v1, %v128_v26 }
  0x88   :  { %v164_v31 = vmul.f32 %v1225_v28, %v1225_v28  ;;  %v1250_v47 = vsub.f32 %v1194_v2, %v120_v41  ;;  %v925_v41 = vld [vmem:[#allocation7 + $0x28] sm:$0xff] }
  0x89   :  { %v160_v30 = vmul.f32 %v1227_v29, %v1227_v29 }
  0x8a   :  { %192 = vadd.xlane.f32.xlu0 %v164_v31  ;;  %v152_v55 = vmul.f32 %v1250_v47, %v1250_v47  ;;  %v927_v31 = vld [vmem:[#allocation7 + $0x38] sm:$0xff] }
  0x8b   :  { %184 = vadd.xlane.f32.xlu1 %v160_v30  ;;  %v108_v32 = vpop.xlane.xlu1 %107  ;;  %929 = vmatpush.bf16.msra.mxu2 %v927_v31 }
  0x8c   :  { %v100_v33 = vpop.xlane.xlu0 %99  ;;  %v133_v34 = vmul.f32 %v1221_v22, %v108_v32  ;;  %930 = vmatpush.bf16.msra.mxu3 %v927_v31  ;;  %787 = vmatpush.bf16.msra.mxu0 %v927_v31 }
  0x8d   :  { %v129_v35 = vmul.f32 %v1221_v22, %v100_v33  ;;  %v84_v36 = vpop.xlane.xlu2 %83  ;;  %928 = vmatpush.bf16.msra.mxu1 %v927_v31 }
  0x8e   :  { %v121_v37 = vmul.f32 %v1221_v22, %v84_v36  ;;  %v1236_v38 = vsub.f32 %v75_v3, %v133_v34 }
  0x8f   :  { %v1238_v39 = vsub.f32 %v71_v4, %v129_v35 }
  0x90   :  { %v1240_v40 = vsub.f32 %v63_v5, %v121_v37  ;;  %v165_v42 = vmul.f32 %v1236_v38, %v1236_v38 }
  0x91   :  { %v161_v43 = vmul.f32 %v1238_v39, %v1238_v39 }
  0x92   :  { %v153_v44 = vmul.f32 %v1240_v40, %v1240_v40 }
  0x93   :  { %194 = vadd.xlane.f32.xlu1 %v165_v42  ;;  %186 = vadd.xlane.f32.xlu2 %v161_v43  ;;  %v92_v46 = vpop.xlane.xlu1 %91 }
  0x94   :  { %170 = vadd.xlane.f32.xlu0 %v153_v44  ;;  %v90_v45 = vpop.xlane.xlu0 %89  ;;  %v125_v52 = vmul.f32 %v1221_v22, %v92_v46  ;;  %v924_v44 = vld [vmem:[#allocation7 + $0x20] sm:$0xff] }
  0x95   :  { %v124_v48 = vmul.f32 %v1221_v22, %v90_v45  ;;  %v102_v49 = vpop.xlane.xlu2 %101 }
  0x96   :  { %v130_v50 = vmul.f32 %v1221_v22, %v102_v49  ;;  %v1266_v57 = vsub.f32 %v1197_v7, %v125_v52 }
  0x97   :  { %v1254_v51 = vsub.f32 %v66_v6, %v124_v48 }
  0x98   :  { %v1257_v53 = vsub.f32 %v72_v8, %v130_v50  ;;  %v157_v0 = vmul.f32 %v1266_v57, %v1266_v57 }
  0x99   :  { %v156_v54 = vmul.f32 %v1254_v51, %v1254_v51 }
  0x9a   :  { %v162_v56 = vmul.f32 %v1257_v53, %v1257_v53 }
  0x9b   :  { %176 = vadd.xlane.f32.xlu1 %v156_v54  ;;  %168 = vadd.xlane.f32.xlu2 %v152_v55  ;;  %v110_v59 = vpop.xlane.xlu1 %109 }
  0x9c   :  { %188 = vadd.xlane.f32.xlu0 %v162_v56  ;;  %v104_v58 = vpop.xlane.xlu0 %103  ;;  %v134_v1 = vmul.f32 %v1221_v22, %v110_v59  ;;  %v923_v59 = vld [vmem:[#allocation7 + $0x18] sm:$0xff] }
  0x9d   :  { %v131_v60 = vmul.f32 %v1221_v22, %v104_v58  ;;  %v112_v61 = vpop.xlane.xlu2 %111 }
  0x9e   :  { %v135_v62 = vmul.f32 %v1221_v22, %v112_v61  ;;  %v1284_v5 = vsub.f32 %v1202_v10, %v134_v1 }
  0x9f   :  { %v1271_v63 = vsub.f32 %v1200_v9, %v131_v60 }
  0xa0   :  { %v1277_v2 = vsub.f32 %v1204_v11, %v135_v62  ;;  %v166_v17 = vmul.f32 %v1284_v5, %v1284_v5 }
  0xa1   :  { %v163_v3 = vmul.f32 %v1271_v63, %v1271_v63 }
  0xa2   :  { %v167_v4 = vmul.f32 %v1277_v2, %v1277_v2 }
  0xa3   :  { %190 = vadd.xlane.f32.xlu1 %v163_v3  ;;  %178 = vadd.xlane.f32.xlu2 %v157_v0  ;;  %v88_v7 = vpop.xlane.xlu1 %87 }
  0xa4   :  { %198 = vadd.xlane.f32.xlu0 %v167_v4  ;;  %v86_v6 = vpop.xlane.xlu0 %85  ;;  %v123_v18 = vmul.f32 %v1221_v22, %v88_v7 }
  0xa5   :  { %v122_v8 = vmul.f32 %v1221_v22, %v86_v6  ;;  %v94_v9 = vpop.xlane.xlu2 %93  ;;  %v922_v6 = vld [vmem:[#allocation7 + $0x10] sm:$0xff] }
  0xa6   :  { %v126_v11 = vmul.f32 %v1221_v22, %v94_v9  ;;  %v1302_v21 = vsub.f32 %v1211_v13, %v123_v18 }
  0xa7   :  { %v1289_v16 = vsub.f32 %v1209_v12, %v122_v8 }
  0xa8   :  { %v1295_v19 = vsub.f32 %v1213_v14, %v126_v11  ;;  %v155_v14 = vmul.f32 %v1302_v21, %v1302_v21 }
  0xa9   :  { %v154_v10 = vmul.f32 %v1289_v16, %v1289_v16 }
  0xaa   :  { %v158_v20 = vmul.f32 %v1295_v19, %v1295_v19 }
  0xab   :  { %172 = vadd.xlane.f32.xlu1 %v154_v10  ;;  %196 = vadd.xlane.f32.xlu2 %v166_v17 }
  0xac   :  { %180 = vadd.xlane.f32.xlu0 %v158_v20  ;;  %v96_v12 = vpop.xlane.xlu0 %95 }
  0xad   :  { %v127_v23 = vmul.f32 %v1221_v22, %v96_v12 }
  0xaf   :  { %v1306_v24 = vsub.f32 %v1218_v15, %v127_v23  ;;  %v926_v15 = vld [vmem:[#allocation7 + $0x30] sm:$0xff] }
  0xb0   :  { %932 = vmatpush.bf16.msra.mxu2 %v926_v15  ;;  %933 = vmatpush.bf16.msra.mxu3 %v926_v15 }
  0xb1   :  { %1912 = vst [vmem:[#allocation14_spill] sm:$0xff] %v1306_v24  ;;  %v159_v25 = vmul.f32 %v1306_v24, %v1306_v24  ;;  %788 = vmatpush.bf16.msra.mxu0 %v926_v15  ;;  %931 = vmatpush.bf16.msra.mxu1 %v926_v15 }
  0xb3   :  { %182 = vadd.xlane.f32.xlu1 %v159_v25  ;;  %174 = vadd.xlane.f32.xlu2 %v155_v14 }
  0xb4   :  { %935 = vmatpush.bf16.msra.mxu2 %v925_v41  ;;  %936 = vmatpush.bf16.msra.mxu3 %v925_v41 }
  0xb5   :  { %789 = vmatpush.bf16.msra.mxu0 %v925_v41  ;;  %934 = vmatpush.bf16.msra.mxu1 %v925_v41 }
  0xb8   :  { %938 = vmatpush.bf16.msra.mxu2 %v924_v44  ;;  %939 = vmatpush.bf16.msra.mxu3 %v924_v44 }
  0xb9   :  { %790 = vmatpush.bf16.msra.mxu0 %v924_v44  ;;  %937 = vmatpush.bf16.msra.mxu1 %v924_v44 }
  0xbc   :  { %941 = vmatpush.bf16.msra.mxu2 %v923_v59  ;;  %942 = vmatpush.bf16.msra.mxu3 %v923_v59 }
  0xbd   :  { %791 = vmatpush.bf16.msra.mxu0 %v923_v59  ;;  %940 = vmatpush.bf16.msra.mxu1 %v923_v59 }
  0xc0   :  { %944 = vmatpush.bf16.msra.mxu2 %v922_v6  ;;  %945 = vmatpush.bf16.msra.mxu3 %v922_v6 }
  0xc1   :  { %792 = vmatpush.bf16.msra.mxu0 %v922_v6  ;;  %943 = vmatpush.bf16.msra.mxu1 %v922_v6 }
  0xfd   :  { %v193_v27 = vpop.xlane.xlu0 %192 }
  0xfe   :  { %v185_v26 = vpop.xlane.xlu1 %184  ;;  %v1314_v13 = vmul.f32 0.007874016, %v193_v27 }
  0xff   :  { %v1312_v30 = vmul.f32 0.007874016, %v185_v26  ;;  %v921_v26 = vld [vmem:[#allocation7 + $0x8] sm:$0xff] }
 0x100   :  { %947 = vmatpush.bf16.msra.mxu2 %v921_v26  ;;  %948 = vmatpush.bf16.msra.mxu3 %v921_v26  ;;  %vm367_vm2 = vcmp.eq.f32.partialorder %v1314_v13, inf  ;;  %vm369_vm13 = vcmp.eq.f32.partialorder %v1314_v13, 0.0 }
 0x101   :  { %966 = vrsqrt.f32 %v1312_v30  ;;  %vm319_vm1 = vcmp.eq.f32.partialorder %v1312_v30, inf  ;;  %793 = vmatpush.bf16.msra.mxu0 %v921_v26  ;;  %v322_v44 = vand.u32 2147483648, %v1312_v30  ;;  %946 = vmatpush.bf16.msra.mxu1 %v921_v26  ;;  %vm321_vm5 = vcmp.eq.f32.partialorder %v1312_v30, 0.0 }
 0x102   :  { %968 = vrsqrt.f32 %v1314_v13 }
 0x106   :  { %v195_v22 = vpop.xlane.xlu1 %194  ;;  %v187_v32 = vpop.xlane.xlu2 %186 }
 0x107   :  { %v1318_v33 = vmul.f32 0.007874016, %v195_v22  ;;  %v171_v34 = vpop.xlane.xlu0 %170  ;;  %v1320_v35 = vmul.f32 0.007874016, %v187_v32  ;;  %v1322_v36 = vpop.eup %966 }
 0x108   :  { %v1324_v37 = vmul.f32 0.007874016, %v171_v34  ;;  %v1327_v42 = vpop.eup %968  ;;  %v313_v43 = vmul.f32 %v1322_v36, %v1312_v30 }
 0x109   :  { %970 = vrsqrt.f32 %v1318_v33  ;;  %v361_v45 = vmul.f32 %v1327_v42, %v1314_v13  ;;  %v382_v59 = vand.u32 2147483648, %v1318_v33  ;;  %vm379_vm3 = vcmp.eq.f32.partialorder %v1318_v33, inf }
 0x10a   :  { %972 = vrsqrt.f32 %v1324_v37  ;;  %v314_v50 = vmul.f32 %v1322_v36, %v313_v43  ;;  %vm235_vm4 = vcmp.eq.f32.partialorder %v1324_v37, inf  ;;  %vm331_vm6 = vcmp.eq.f32.partialorder %v1320_v35, inf }
 0x10b   :  { %974 = vrsqrt.f32 %v1320_v35  ;;  %v362_v61 = vmul.f32 %v1327_v42, %v361_v45  ;;  %vm333_vm7 = vcmp.eq.f32.partialorder %v1320_v35, 0.0  ;;  %vm381_vm15 = vcmp.eq.f32.partialorder %v1318_v33, 0.0 }
 0x10c   :  { %v315_v3 = vmul.f32 0.5, %v314_v50  ;;  %v370_v50 = vand.u32 2147483648, %v1314_v13 }
 0x10d   :  { %v363_v7 = vmul.f32 0.5, %v362_v61 }
 0x10e   :  { %v177_v46 = vpop.xlane.xlu1 %176  ;;  %v169_v48 = vpop.xlane.xlu2 %168  ;;  %v316_v10 = vsub.f32 1.5, %v315_v3 }
 0x10f   :  { %v1335_v49 = vpop.eup %970  ;;  %v1338_v52 = vmul.f32 0.007874016, %v177_v46  ;;  %v189_v54 = vpop.xlane.xlu0 %188  ;;  %v1354_v1 = vmul.f32 0.007874016, %v169_v48  ;;  %v364_v31 = vsub.f32 1.5, %v363_v7  ;;  %v920_v48 = vld [vmem:[#allocation7] sm:$0xff] }
 0x110   :  { %v1340_v55 = vpop.eup %972  ;;  %v373_v56 = vmul.f32 %v1335_v49, %v1318_v33  ;;  %v1344_v58 = vmul.f32 0.007874016, %v189_v54  ;;  %v317_v34 = vmul.f32 %v1322_v36, %v316_v10  ;;  %950 = vmatpush.bf16.msra.mxu2 %v920_v48  ;;  %951 = vmatpush.bf16.msra.mxu3 %v920_v48 }
 0x111   :  { %v1346_v60 = vpop.eup %974  ;;  %v229_v62 = vmul.f32 %v1340_v55, %v1324_v37  ;;  %976 = vrsqrt.f32 %v1338_v52  ;;  %v365_v36 = vmul.f32 %v1327_v42, %v364_v31  ;;  %794 = vmatpush.bf16.msra.mxu0 %v920_v48  ;;  %949 = vmatpush.bf16.msra.mxu1 %v920_v48  ;;  %vm271_vm8 = vcmp.eq.f32.partialorder %v1338_v52, inf }
 0x112   :  { %v325_v0 = vmul.f32 %v1346_v60, %v1320_v35  ;;  %978 = vrsqrt.f32 %v1344_v58  ;;  %v374_v4 = vmul.f32 %v1335_v49, %v373_v56  ;;  %v318_v42 = vmul.f32 %v317_v34, %v1312_v30 }
 0x113   :  { %v230_v8 = vmul.f32 %v1340_v55, %v229_v62  ;;  %980 = vrsqrt.f32 %v1354_v1  ;;  %vm343_vm9 = vcmp.eq.f32.partialorder %v1344_v58, inf  ;;  %vm223_vm10 = vcmp.eq.f32.partialorder %v1354_v1, inf }
 0x114   :  { %v326_v9 = vmul.f32 %v1346_v60, %v325_v0  ;;  %v375_v23 = vmul.f32 0.5, %v374_v4 }
 0x115   :  { %v231_v15 = vmul.f32 0.5, %v230_v8 }
 0x116   :  { %v191_v11 = vpop.xlane.xlu1 %190  ;;  %v179_v17 = vpop.xlane.xlu2 %178  ;;  %v327_v22 = vmul.f32 0.5, %v326_v9  ;;  %v376_v45 = vsub.f32 1.5, %v375_v23  ;;  %v366_v23 = vmul.f32 %v365_v36, %v1314_v13 }
 0x117   :  { %v1361_v18 = vpop.eup %976  ;;  %v1363_v20 = vmul.f32 0.007874016, %v191_v11  ;;  %v199_v12 = vpop.xlane.xlu0 %198  ;;  %v232_v54 = vsub.f32 1.5, %v231_v15  ;;  %v1389_v0 = vmul.f32 0.007874016, %v179_v17 }
 0x118   :  { %v265_v14 = vmul.f32 %v1361_v18, %v1338_v52  ;;  %v1367_v25 = vmul.f32 0.007874016, %v199_v12  ;;  %v1369_v27 = vpop.eup %978  ;;  %v328_v62 = vsub.f32 1.5, %v327_v22  ;;  %v377_v11 = vmul.f32 %v1335_v49, %v376_v45 }
 0x119   :  { %982 = vrsqrt.f32 %v1363_v20  ;;  %v337_v32 = vmul.f32 %v1369_v27, %v1344_v58  ;;  %v1378_v43 = vpop.eup %980  ;;  %v334_v49 = vand.u32 2147483648, %v1320_v35  ;;  %vm355_vm11 = vcmp.eq.f32.partialorder %v1363_v20, inf }
 0x11a   :  { %v266_v41 = vmul.f32 %v1361_v18, %v265_v14  ;;  %984 = vrsqrt.f32 %v1367_v25  ;;  %v217_v56 = vmul.f32 %v1378_v43, %v1354_v1  ;;  %v233_v14 = vmul.f32 %v1340_v55, %v232_v54 }
 0x11b   :  { %v338_v46 = vmul.f32 %v1369_v27, %v337_v32  ;;  %986 = vrsqrt.f32 %v1389_v0  ;;  %v329_v31 = vmul.f32 %v1346_v60, %v328_v62  ;;  %v320_v55 = vsel %vm319_vm1, %v1312_v30, %v318_v42 }
 0x11c   :  { %v267_v7 = vmul.f32 0.5, %v266_v41  ;;  %v218_v17 = vmul.f32 %v1378_v43, %v217_v56  ;;  %v1426_v54 = vsel %vm367_vm2, %v1314_v13, %v366_v23  ;;  %v234_v56 = vmul.f32 %v233_v14, %v1324_v37 }
 0x11d   :  { %v339_v8 = vmul.f32 0.5, %v338_v46  ;;  %v378_v46 = vmul.f32 %v377_v11, %v1318_v33  ;;  %vm403_vm12 = vcmp.eq.f32.partialorder %v1367_v25, inf  ;;  %vm283_vm14 = vcmp.eq.f32.partialorder %v1389_v0, inf }
 0x11e   :  { %v173_v3 = vpop.xlane.xlu1 %172  ;;  %v197_v4 = vpop.xlane.xlu2 %196  ;;  %v268_v41 = vsub.f32 1.5, %v267_v7  ;;  %v219_v48 = vmul.f32 0.5, %v218_v17  ;;  %vm225_vm1 = vcmp.eq.f32.partialorder %v1354_v1, 0.0 }
 0x11f   :  { %v1391_v6 = vpop.eup %982  ;;  %v1395_v9 = vmul.f32 0.007874016, %v173_v3  ;;  %v1410_v26 = vmul.f32 0.007874016, %v197_v4  ;;  %v181_v34 = vpop.xlane.xlu0 %180  ;;  %v340_v45 = vsub.f32 1.5, %v339_v8  ;;  %v330_v4 = vmul.f32 %v329_v31, %v1320_v35 }
 0x120   :  { %v349_v10 = vmul.f32 %v1391_v6, %v1363_v20  ;;  %v1403_v12 = vpop.eup %984  ;;  %v1430_v62 = vmul.f32 0.007874016, %v181_v34  ;;  %v269_v11 = vmul.f32 %v1361_v18, %v268_v41  ;;  %v1443_v14 = vsel %vm379_vm3, %v1318_v33, %v378_v46 }
 0x121   :  { %v397_v32 = vmul.f32 %v1403_v12, %v1367_v25  ;;  %988 = vrsqrt.f32 %v1395_v9  ;;  %v987_v3 = vpop.eup %986  ;;  %v341_v17 = vmul.f32 %v1369_v27, %v340_v45  ;;  %v220_v31 = vsub.f32 1.5, %v219_v48 }
 0x122   :  { %v350_v22 = vmul.f32 %v1391_v6, %v349_v10  ;;  %990 = vrsqrt.f32 %v1410_v26  ;;  %v277_v10 = vmul.f32 %v987_v3, %v1389_v0  ;;  %v1449_v18 = vsel %vm235_vm4, %v1324_v37, %v234_v56 }
 0x123   :  { %v398_v36 = vmul.f32 %v1403_v12, %v397_v32  ;;  %992 = vrsqrt.f32 %v1430_v62  ;;  %v332_v46 = vsel %vm331_vm6, %v1320_v35, %v330_v4  ;;  %v323_v56 = vsel %vm321_vm5, %v322_v44, %v320_v55 }
 0x124   :  { %v351_v60 = vmul.f32 0.5, %v350_v22  ;;  %v278_v45 = vmul.f32 %v987_v3, %v277_v10  ;;  %v270_v42 = vmul.f32 %v269_v11, %v1338_v52  ;;  %v221_v4 = vmul.f32 %v1378_v43, %v220_v31 }
 0x125   :  { %v399_v8 = vmul.f32 0.5, %v398_v36  ;;  %vm247_vm0 = vcmp.eq.f32.partialorder %v1395_v9, inf  ;;  %vm391_vm2 = vcmp.eq.f32.partialorder %v1410_v26, inf  ;;  %vm295_vm4 = vcmp.eq.f32.partialorder %v1430_v62, inf }
 0x126   :  { %v183_v23 = vpop.xlane.xlu1 %182  ;;  %v352_v22 = vsub.f32 1.5, %v351_v60  ;;  %v175_v34 = vpop.xlane.xlu2 %174  ;;  %v279_v10 = vmul.f32 0.5, %v278_v45  ;;  %v1476_v45 = vadd.f32 1e-06, %v323_v56  ;;  %vm237_vm5 = vcmp.eq.f32.partialorder %v1324_v37, 0.0 }
 0x127   :  { %v989_v36 = vpop.eup %988  ;;  %v400_v27 = vsub.f32 1.5, %v399_v8  ;;  %v1458_v60 = vmul.f32 0.007874016, %v183_v23  ;;  %v342_v8 = vmul.f32 %v341_v17, %v1344_v58  ;;  %v1467_v41 = vmul.f32 0.007874016, %v175_v34 }
 0x128   :  { %v241_v48 = vmul.f32 %v989_v36, %v1395_v9  ;;  %v991_v32 = vpop.eup %990  ;;  %v353_v23 = vmul.f32 %v1391_v6, %v352_v22  ;;  %v280_v17 = vsub.f32 1.5, %v279_v10  ;;  %v335_v6 = vsel %vm333_vm7, %v334_v49, %v332_v46 }
 0x129   :  { %v385_v44 = vmul.f32 %v991_v32, %v1410_v26  ;;  %v993_v55 = vpop.eup %992  ;;  %v401_v11 = vmul.f32 %v1403_v12, %v400_v27  ;;  %994 = vrsqrt.f32 %v1458_v60  ;;  %v222_v27 = vmul.f32 %v221_v4, %v1354_v1 }
 0x12a   :  { %v242_v30 = vmul.f32 %v989_v36, %v241_v48  ;;  %v289_v43 = vmul.f32 %v993_v55, %v1430_v62  ;;  %v281_v22 = vmul.f32 %v987_v3, %v280_v17  ;;  %996 = vrsqrt.f32 %v1467_v41 }
 0x12b   :  { %v386_v31 = vmul.f32 %v991_v32, %v385_v44  ;;  %v402_v35 = vmul.f32 %v401_v11, %v1367_v25  ;;  %v1491_v49 = vadd.f32 1e-06, %v335_v6  ;;  %998 = vrcp.f32 %v1476_v45 }
 0x12c   :  { %v243_v34 = vmul.f32 0.5, %v242_v30  ;;  %v290_v56 = vmul.f32 %v993_v55, %v289_v43  ;;  %v354_v30 = vmul.f32 %v353_v23, %v1363_v20  ;;  %v1497_v3 = vsel %vm271_vm8, %v1338_v52, %v270_v42 }
 0x12d   :  { %v387_v10 = vmul.f32 0.5, %v386_v31  ;;  %v1502_v46 = vsel %vm343_vm9, %v1344_v58, %v342_v8  ;;  %v282_v11 = vmul.f32 %v281_v22, %v1389_v0  ;;  %1000 = vrcp.f32 %v1491_v49 }
 0x12e   :  { %v244_v48 = vsub.f32 1.5, %v243_v34  ;;  %v291_v44 = vmul.f32 0.5, %v290_v56  ;;  %v224_v42 = vsel %vm223_vm10, %v1354_v1, %v222_v27  ;;  %v1518_v22 = vsel %vm355_vm11, %v1363_v20, %v354_v30 }
 0x12f   :  { %v995_v23 = vpop.eup %994  ;;  %v388_v34 = vsub.f32 1.5, %v387_v10  ;;  %v1523_v56 = vsel %vm403_vm12, %v1367_v25, %v402_v35  ;;  %v555_v30 = vand.u32 2147483648, %v1476_v45  ;;  %v1534_v35 = vsel %vm283_vm14, %v1389_v0, %v282_v11 }
 0x130   :  { %v245_v43 = vmul.f32 %v989_v36, %v244_v48  ;;  %v301_v8 = vmul.f32 %v995_v23, %v1458_v60  ;;  %v1513_v6 = vpop.eup %996  ;;  %v292_v27 = vsub.f32 1.5, %v291_v44  ;;  %v553_v36 = vand.u32 2147483647, %v1476_v45 }
 0x131   :  { %v999_v4 = vpop.eup %998  ;;  %v389_v31 = vmul.f32 %v991_v32, %v388_v34  ;;  %v253_v44 = vmul.f32 %v1513_v6, %v1467_v41  ;;  %vm549_vm3 = vweird.f32 %v1476_v45  ;;  %v371_v32 = vsel %vm369_vm13, %v370_v50, %v1426_v54 }
 0x132   :  { %v302_v48 = vmul.f32 %v995_v23, %v301_v8  ;;  %v246_v8 = vmul.f32 %v245_v43, %v1395_v9  ;;  %v545_v17 = vmul.f32 %v999_v4, %v1476_v45  ;;  %v293_v34 = vmul.f32 %v993_v55, %v292_v27 }
 0x133   :  { %v1001_v11 = vpop.eup %1000  ;;  %v254_v12 = vmul.f32 %v1513_v6, %v253_v44  ;;  %vm1550_vm6 = vcmp.eq.f32.partialorder %v553_v36, 8.507059e+37  ;;  %v383_v43 = vsel %vm381_vm15, %v382_v59, %v1443_v14  ;;  %v556_v61 = vor.u32 1.1754944e-38, %v555_v30 }
 0x134   :  { %v303_v10 = vmul.f32 0.5, %v302_v48  ;;  %v546_v48 = vsub.f32 1.0, %v545_v17  ;;  %v560_v13 = vmul.f32 %v1001_v11, %v1491_v49  ;;  %v568_v50 = vand.u32 2147483647, %v1491_v49 }
 0x135   :  { %v390_v54 = vmul.f32 %v389_v31, %v1410_v26  ;;  %v1562_v27 = vadd.f32 1e-06, %v371_v32  ;;  %v1564_v36 = vadd.f32 1e-06, %v383_v43  ;;  %v255_v44 = vmul.f32 0.5, %v254_v12 }
 0x136   :  { %v304_v55 = vsub.f32 1.5, %v303_v10  ;;  %v547_v7 = vmul.f32 %v999_v4, %v546_v48  ;;  %vm550_vm7 = vweird.f32 %v999_v4  ;;  %v561_v24 = vsub.f32 1.0, %v560_v13 }
 0x137   :  { %v294_v33 = vmul.f32 %v293_v34, %v1430_v62  ;;  %vm564_vm8 = vweird.f32 %v1491_v49  ;;  %v570_v59 = vand.u32 2147483648, %v1491_v49  ;;  %1002 = vrcp.f32 %v1562_v27  ;;  %vm551_vm10 = vmor %vm549_vm3, %vm550_vm7 }
 0x138   :  { %v1573_v14 = vsel %vm247_vm0, %v1395_v9, %v246_v8  ;;  %v548_v17 = vadd.f32 %v999_v4, %v547_v7  ;;  %v562_v31 = vmul.f32 %v1001_v11, %v561_v24  ;;  %vm565_vm9 = vweird.f32 %v1001_v11  ;;  %v1592_v8 = vld [vmem:[#allocation9] ss:$0 sm:$0xff] }
 0x139   :  { %v305_v12 = vmul.f32 %v995_v23, %v304_v55  ;;  %vm1577_vm11 = vcmp.eq.f32.partialorder %v568_v50, 8.507059e+37  ;;  %1004 = vrcp.f32 %v1564_v36  ;;  %v1917_v30 = vand.u32 2147483648, %v1354_v1  ;;  %vm566_vm14 = vmor %vm564_vm8, %vm565_vm9 }
 0x13a   :  { %vm273_vm12 = vcmp.eq.f32.partialorder %v1338_v52, 0.0  ;;  %v1590_v24 = vsel %vm391_vm2, %v1410_v26, %v390_v54  ;;  %v256_v7 = vsub.f32 1.5, %v255_v44  ;;  %v552_v45 = vsel %vm551_vm10, %v999_v4, %v548_v17 }
 0x13b   :  { %v227_v32 = vsel %vm225_vm1, %v1917_v30, %v224_v42  ;;  %v563_v23 = vadd.f32 %v1001_v11, %v562_v31  ;;  %vm285_vm13 = vcmp.eq.f32.partialorder %v1389_v0, 0.0  ;;  %v1598_v34 = vsel %vm295_vm4, %v1430_v62, %v294_v33 }
 0x13c   :  { %v557_v1 = vsel %vm1550_vm6, %v556_v61, %v552_v45  ;;  %v571_v42 = vor.u32 1.1754944e-38, %v570_v59  ;;  %v613_v4 = vand.u32 2147483647, %v1562_v27  ;;  %v1918_v13 = vand.u32 2147483648, %v1324_v37 }
 0x13d   :  { %v567_v43 = vsel %vm566_vm14, %v1001_v11, %v563_v23  ;;  %v672_v48 = vmul.f32 %v557_v1, %v1227_v29  ;;  %v1612_v54 = vadd.f32 1e-06, %v227_v32  ;;  %v1003_v15 = vpop.eup %1002  ;;  %v1615_v61 = vmul.f32 %v305_v12, %v1458_v60 }
 0x13e   :  { %v239_v50 = vsel %vm237_vm5, %v1918_v13, %v1449_v18  ;;  %v572_v49 = vsel %vm1577_vm11, %v571_v42, %v567_v43  ;;  %vm609_vm15 = vweird.f32 %v1562_v27  ;;  %v615_v11 = vand.u32 2147483648, %v1562_v27  ;;  %v1626_v18 = vld [vmem:[#allocation9 + $0x1] ss:$0 sm:$0xff] }
 0x13f   :  { %v1622_v29 = vmul.f32 %v1513_v6, %v256_v7  ;;  %v673_v55 = vmul.f32 %v572_v49, %v1238_v39  ;;  %v689_v37 = vmul.f32 %v1592_v8, %v672_v48  ;;  %v605_v44 = vmul.f32 %v1003_v15, %v1562_v27  ;;  %v1005_v33 = vpop.eup %1004 }
 0x140   :  { %v628_v59 = vand.u32 2147483647, %v1564_v36  ;;  %v630_v17 = vand.u32 2147483648, %v1564_v36  ;;  %v1631_v31 = vadd.f32 1e-06, %v239_v50  ;;  %1006 = vrcp.f32 %v1612_v54 }
 0x141   :  { %v690_v6 = vmul.f32 %v1592_v8, %v673_v55  ;;  %v606_v12 = vsub.f32 1.0, %v605_v44  ;;  %vm1635_vm0 = vcmp.eq.f32.partialorder %v613_v4, 8.507059e+37  ;;  %v620_v10 = vmul.f32 %v1005_v33, %v1564_v36 }
 0x142   :  { %vm610_vm1 = vweird.f32 %v1003_v15  ;;  %v616_v30 = vor.u32 1.1754944e-38, %v615_v11  ;;  %vm624_vm2 = vweird.f32 %v1564_v36  ;;  %1008 = vrcp.f32 %v1631_v31 }
 0x143   :  { %v706_v32 = vadd.f32 %v1626_v18, %v689_v37  ;;  %v707_v7 = vadd.f32 %v1626_v18, %v690_v6  ;;  %v607_v45 = vmul.f32 %v1003_v15, %v606_v12  ;;  %v621_v23 = vsub.f32 1.0, %v620_v10  ;;  %vm611_vm7 = vmor %vm609_vm15, %vm610_vm1 }
 0x144   :  { %vm625_vm3 = vweird.f32 %v1005_v33  ;;  %vm1644_vm4 = vcmp.eq.f32.partialorder %v628_v59, 8.507059e+37  ;;  %v631_v42 = vor.u32 1.1754944e-38, %v630_v17  ;;  %v1923_v4 = vand.u32 2147483648, %v1338_v52 }
 0x145   :  { %vm345_vm5 = vcmp.eq.f32.partialorder %v1344_v58, 0.0  ;;  %vm357_vm6 = vcmp.eq.f32.partialorder %v1363_v20, 0.0  ;;  %v718_v48 = vpack.c.bf16 %v707_v7, %v706_v32  ;;  %v608_v13 = vadd.f32 %v1003_v15, %v607_v45  ;;  %vm626_vm9 = vmor %vm624_vm2, %vm625_vm3 }
 0x146   :  { %v275_v43 = vsel %vm273_vm12, %v1923_v4, %v1497_v3  ;;  %v622_v50 = vmul.f32 %v1005_v33, %v621_v23  ;;  %v1924_v49 = vand.u32 2147483648, %v1389_v0  ;;  %v1007_v55 = vpop.eup %1006  ;;  %vm429_vm8 = vweird.f32 %v1612_v54 }
 0x147   :  { %v433_v52 = vand.u32 2147483647, %v1612_v54  ;;  %v435_v3 = vand.u32 2147483648, %v1612_v54  ;;  %v1666_v37 = vadd.f32 1e-06, %v275_v43  ;;  %815 = vmatmul.bf16.vlgmr.msra.gmra.mxu2 %v718_v48  ;;  %v612_v44 = vsel %vm611_vm7, %v1003_v15, %v608_v13 }
 0x148   :  { %v287_v11 = vsel %vm285_vm13, %v1924_v49, %v1534_v35  ;;  %v623_v59 = vadd.f32 %v1005_v33, %v622_v50  ;;  %v425_v17 = vmul.f32 %v1007_v55, %v1612_v54  ;;  %v448_v0 = vand.u32 2147483647, %v1631_v31  ;;  %v1009_v35 = vpop.eup %1008 }
 0x149   :  { %v617_v27 = vsel %vm1635_vm0, %v616_v30, %v612_v44  ;;  %v450_v6 = vand.u32 2147483648, %v1631_v31  ;;  %v1676_v12 = vadd.f32 1e-06, %v287_v11  ;;  %1010 = vrcp.f32 %v1666_v37 }
 0x14a   :  { %v627_v15 = vsel %vm626_vm9, %v1005_v33, %v623_v59  ;;  %v676_v10 = vmul.f32 %v617_v27, %v1225_v28  ;;  %v426_v32 = vsub.f32 1.0, %v425_v17  ;;  %v440_v7 = vmul.f32 %v1009_v35, %v1631_v31 }
 0x14b   :  { %v632_v39 = vsel %vm1644_vm4, %v631_v42, %v627_v15  ;;  %vm430_vm10 = vweird.f32 %v1007_v55  ;;  %vm1683_vm11 = vcmp.eq.f32.partialorder %v433_v52, 8.507059e+37  ;;  %vm444_vm12 = vweird.f32 %v1631_v31 }
 0x14c   :  { %v677_v36 = vmul.f32 %v632_v39, %v1236_v38  ;;  %v693_v45 = vmul.f32 %v1592_v8, %v676_v10  ;;  %v427_v33 = vmul.f32 %v1007_v55, %v426_v32  ;;  %v441_v23 = vsub.f32 1.0, %v440_v7  ;;  %vm431_vm15 = vmor %vm429_vm8, %vm430_vm10 }
 0x14d   :  { %v436_v28 = vor.u32 1.1754944e-38, %v435_v3  ;;  %vm1690_vm13 = vcmp.eq.f32.partialorder %v448_v0, 8.507059e+37  ;;  %v451_v1 = vor.u32 1.1754944e-38, %v450_v6  ;;  %1012 = vrcp.f32 %v1676_v12 }
 0x14e   :  { %v694_v42 = vmul.f32 %v1592_v8, %v677_v36  ;;  %v428_v43 = vadd.f32 %v1007_v55, %v427_v33  ;;  %v442_v48 = vmul.f32 %v1009_v35, %v441_v23  ;;  %vm445_vm14 = vweird.f32 %v1009_v35 }
 0x14f   :  { %v1011_v13 = vpop.eup %1010  ;;  %v710_v38 = vadd.f32 %v1626_v18, %v693_v45  ;;  %v493_v50 = vand.u32 2147483647, %v1666_v37  ;;  %v1929_v49 = vand.u32 2147483648, %v1344_v58  ;;  %v1930_v52 = vand.u32 2147483648, %v1363_v20  ;;  %vm446_vm2 = vmor %vm444_vm12, %vm445_vm14 }
 0x150   :  { %vm405_vm0 = vcmp.eq.f32.partialorder %v1367_v25, 0.0  ;;  %vm393_vm1 = vcmp.eq.f32.partialorder %v1410_v26, 0.0  ;;  %v711_v54 = vadd.f32 %v1626_v18, %v694_v42  ;;  %v432_v44 = vsel %vm431_vm15, %v1007_v55, %v428_v43 }
 0x151   :  { %v347_v11 = vsel %vm345_vm5, %v1929_v49, %v1502_v46  ;;  %v359_v3 = vsel %vm357_vm6, %v1930_v52, %v1518_v22  ;;  %v443_v59 = vadd.f32 %v1009_v35, %v442_v48  ;;  %v485_v17 = vmul.f32 %v1011_v13, %v1666_v37 }
 0x152   :  { %v437_v58 = vsel %vm1683_vm11, %v436_v28, %v432_v44  ;;  %v495_v46 = vand.u32 2147483648, %v1666_v37  ;;  %v508_v20 = vand.u32 2147483647, %v1676_v12  ;;  %v1721_v22 = vadd.f32 1e-06, %v347_v11 }
 0x153   :  { %vm259_vm3 = vcmp.eq.f32.partialorder %v1467_v41, inf  ;;  %v720_v0 = vpack.c.bf16 %v711_v54, %v710_v38  ;;  %v447_v27 = vsel %vm446_vm2, %v1009_v35, %v443_v59  ;;  %v664_v55 = vmul.f32 %v437_v58, %v1250_v47  ;;  %v1013_v15 = vpop.eup %1012 }
 0x154   :  { %v486_v6 = vsub.f32 1.0, %v485_v17  ;;  %v452_v10 = vsel %vm1690_vm13, %v451_v1, %v447_v27  ;;  %vm490_vm4 = vweird.f32 %v1011_v13  ;;  %v1727_v31 = vadd.f32 1e-06, %v359_v3 }
 0x155   :  { %1014 = vrcp.f32 %v1721_v22  ;;  %825 = vmatmul.bf16.vlgmr.msra.gmra.mxu3 %v720_v0  ;;  %v665_v32 = vmul.f32 %v452_v10, %v1240_v40  ;;  %v681_v7 = vmul.f32 %v1592_v8, %v664_v55  ;;  %v500_v35 = vmul.f32 %v1013_v15, %v1676_v12 }
 0x156   :  { %v487_v39 = vmul.f32 %v1011_v13, %v486_v6  ;;  %v258_v47 = vmul.f32 %v1622_v29, %v1467_v41  ;;  %vm489_vm5 = vweird.f32 %v1666_v37  ;;  %v510_v30 = vand.u32 2147483648, %v1676_v12 }
 0x157   :  { %1016 = vrcp.f32 %v1727_v31  ;;  %v682_v36 = vmul.f32 %v1592_v8, %v665_v32  ;;  %v698_v45 = vadd.f32 %v1626_v18, %v681_v7  ;;  %v501_v40 = vsub.f32 1.0, %v500_v35  ;;  %vm491_vm6 = vmor %vm489_vm5, %vm490_vm4 }
 0x158   :  { %v488_v33 = vadd.f32 %v1011_v13, %v487_v39  ;;  %vm494_vm7 = vcmp.eq.f32.partialorder %v493_v50, 8.507059e+37  ;;  %v496_v23 = vor.u32 1.1754944e-38, %v495_v46  ;;  %vm504_vm8 = vweird.f32 %v1676_v12 }
 0x159   :  { %vm1742_vm9 = vcmp.eq.f32.partialorder %v508_v20, 8.507059e+37  ;;  %vm249_vm10 = vcmp.eq.f32.partialorder %v1395_v9, 0.0  ;;  %v699_v37 = vadd.f32 %v1626_v18, %v682_v36  ;;  %v502_v4 = vmul.f32 %v1013_v15, %v501_v40 }
 0x15a   :  { %v492_v28 = vsel %vm491_vm6, %v1011_v13, %v488_v33  ;;  %vm505_vm11 = vweird.f32 %v1013_v15  ;;  %v511_v43 = vor.u32 1.1754944e-38, %v510_v30  ;;  %v1933_v48 = vand.u32 2147483648, %v1410_v26 }
 0x15b   :  { %v1015_v1 = vpop.eup %1014  ;;  %v497_v42 = vsel %vm494_vm7, %v496_v23, %v492_v28  ;;  %v1934_v50 = vand.u32 2147483648, %v1367_v25  ;;  %vm261_vm12 = vcmp.eq.f32.partialorder %v1467_v41, 0.0  ;;  %v714_v13 = vpack.c.bf16 %v699_v37, %v698_v45  ;;  %vm506_vm13 = vmor %vm504_vm8, %vm505_vm11 }
 0x15c   :  { %v395_v38 = vsel %vm393_vm1, %v1933_v48, %v1590_v24  ;;  %v503_v11 = vadd.f32 %v1013_v15, %v502_v4  ;;  %v668_v52 = vmul.f32 %v497_v42, %v1254_v51  ;;  %v575_v3 = vmul.f32 %v1015_v1, %v1721_v22 }
 0x15d   :  { %v407_v49 = vsel %vm405_vm0, %v1934_v50, %v1523_v56  ;;  %v1017_v54 = vpop.eup %1016  ;;  %v260_v26 = vsel %vm259_vm3, %v1467_v41, %v258_v47  ;;  %v583_v24 = vand.u32 2147483647, %v1721_v22  ;;  %v1767_v25 = vadd.f32 1e-06, %v395_v38  ;;  %795 = vmatmul.bf16.vlgmr.msra.gmra.mxu0 %v714_v13 }
 0x15e   :  { %v1769_v56 = vadd.f32 1e-06, %v407_v49  ;;  %vm307_vm14 = vcmp.eq.f32.partialorder %v1458_v60, inf  ;;  %v507_v51 = vsel %vm506_vm13, %v1013_v15, %v503_v11  ;;  %v576_v44 = vsub.f32 1.0, %v575_v3 }
 0x15f   :  { %v585_v59 = vand.u32 2147483648, %v1721_v22  ;;  %v590_v17 = vmul.f32 %v1017_v54, %v1727_v31  ;;  %v512_v58 = vsel %vm1742_vm9, %v511_v43, %v507_v51  ;;  %vm580_vm15 = vweird.f32 %v1015_v1 }
 0x160   :  { %v598_v12 = vand.u32 2147483647, %v1727_v31  ;;  %1018 = vrcp.f32 %v1767_v25  ;;  %v669_v46 = vmul.f32 %v512_v58, %v1266_v57  ;;  %v685_v20 = vmul.f32 %v1592_v8, %v668_v52 }
 0x161   :  { %v577_v0 = vmul.f32 %v1015_v1, %v576_v44  ;;  %v591_v27 = vsub.f32 1.0, %v590_v17  ;;  %vm579_vm0 = vweird.f32 %v1721_v22  ;;  %vm1781_vm1 = vcmp.eq.f32.partialorder %v583_v24, 8.507059e+37 }
 0x162   :  { %v600_v6 = vand.u32 2147483648, %v1727_v31  ;;  %1020 = vrcp.f32 %v1769_v56  ;;  %v686_v15 = vmul.f32 %v1592_v8, %v669_v46  ;;  %vm595_vm2 = vweird.f32 %v1017_v54  ;;  %vm581_vm3 = vmor %vm579_vm0, %vm580_vm15 }
 0x163   :  { %v578_v10 = vadd.f32 %v1015_v1, %v577_v0  ;;  %v592_v32 = vmul.f32 %v1017_v54, %v591_v27  ;;  %v586_v57 = vor.u32 1.1754944e-38, %v585_v59  ;;  %vm594_vm4 = vweird.f32 %v1727_v31 }
 0x164   :  { %vm1790_vm5 = vcmp.eq.f32.partialorder %v598_v12, 8.507059e+37  ;;  %v1939_v7 = vand.u32 2147483648, %v1395_v9  ;;  %vm297_vm6 = vcmp.eq.f32.partialorder %v1430_v62, 0.0  ;;  %vm309_vm7 = vcmp.eq.f32.partialorder %v1458_v60, 0.0  ;;  %vm596_vm8 = vmor %vm594_vm4, %vm595_vm2 }
 0x165   :  { %v702_v35 = vadd.f32 %v1626_v18, %v685_v20  ;;  %v703_v47 = vadd.f32 %v1626_v18, %v686_v15  ;;  %v582_v30 = vsel %vm581_vm3, %v1015_v1, %v578_v10  ;;  %v593_v31 = vadd.f32 %v1017_v54, %v592_v32 }
 0x166   :  { %v251_v39 = vsel %vm249_vm10, %v1939_v7, %v1573_v14  ;;  %v1019_v36 = vpop.eup %1018  ;;  %v587_v45 = vsel %vm1781_vm1, %v586_v57, %v582_v30  ;;  %v601_v33 = vor.u32 1.1754944e-38, %v600_v6  ;;  %v1940_v40 = vand.u32 2147483648, %v1467_v41 }
 0x167   :  { %v1809_v14 = vadd.f32 1e-06, %v251_v39  ;;  %v716_v23 = vpack.c.bf16 %v703_v47, %v702_v35  ;;  %v597_v29 = vsel %vm596_vm8, %v1017_v54, %v593_v31  ;;  %v674_v37 = vmul.f32 %v587_v45, %v1257_v53 }
 0x168   :  { %v263_v9 = vsel %vm261_vm12, %v1940_v40, %v260_v26  ;;  %v635_v28 = vmul.f32 %v1019_v36, %v1767_v25  ;;  %v1021_v4 = vpop.eup %1020  ;;  %v308_v1 = vsel %vm307_vm14, %v1458_v60, %v1615_v61  ;;  %v602_v42 = vsel %vm1790_vm5, %v601_v33, %v597_v29 }
 0x169   :  { %v1819_v43 = vadd.f32 1e-06, %v263_v9  ;;  %1022 = vrcp.f32 %v1809_v14  ;;  %805 = vmatmul.bf16.vlgmr.msra.gmra.mxu1 %v716_v23  ;;  %v675_v41 = vmul.f32 %v602_v42, %v1271_v63  ;;  %v691_v53 = vmul.f32 %v1592_v8, %v674_v37 }
 0x16a   :  { %v636_v48 = vsub.f32 1.0, %v635_v28  ;;  %v650_v38 = vmul.f32 %v1021_v4, %v1769_v56  ;;  %vm639_vm9 = vweird.f32 %v1767_v25  ;;  %v643_v50 = vand.u32 2147483647, %v1767_v25 }
 0x16b   :  { %v645_v61 = vand.u32 2147483648, %v1767_v25  ;;  %vm654_vm10 = vweird.f32 %v1769_v56  ;;  %v692_v49 = vmul.f32 %v1592_v8, %v675_v41  ;;  %vm640_vm11 = vweird.f32 %v1019_v36 }
 0x16c   :  { %v637_v13 = vmul.f32 %v1019_v36, %v636_v48  ;;  %v651_v11 = vsub.f32 1.0, %v650_v38  ;;  %vm655_vm12 = vweird.f32 %v1021_v4  ;;  %v658_v63 = vand.u32 2147483647, %v1769_v56  ;;  %vm641_vm13 = vmor %vm639_vm9, %vm640_vm11 }
 0x16d   :  { %v660_v52 = vand.u32 2147483648, %v1769_v56  ;;  %1024 = vrcp.f32 %v1819_v43  ;;  %v708_v3 = vadd.f32 %v1626_v18, %v691_v53  ;;  %v709_v54 = vadd.f32 %v1626_v18, %v692_v49  ;;  %vm656_vm15 = vmor %vm654_vm10, %vm655_vm12 }
 0x16e   :  { %v638_v26 = vadd.f32 %v1019_v36, %v637_v13  ;;  %v652_v24 = vmul.f32 %v1021_v4, %v651_v11  ;;  %vm644_vm14 = vcmp.eq.f32.partialorder %v643_v50, 8.507059e+37  ;;  %v646_v44 = vor.u32 1.1754944e-38, %v645_v61 }
 0x16f   :  { %v1023_v51 = vpop.eup %1022  ;;  %v1941_v59 = vand.u32 2147483648, %v1430_v62  ;;  %v1942_v58 = vand.u32 2147483648, %v1458_v60  ;;  %v719_v46 = vpack.c.bf16 %v709_v54, %v708_v3  ;;  %vm659_vm0 = vcmp.eq.f32.partialorder %v658_v63, 8.507059e+37 }
 0x170   :  { %v642_v20 = vsel %vm641_vm13, %v1019_v36, %v638_v26  ;;  %v653_v0 = vadd.f32 %v1021_v4, %v652_v24  ;;  %v455_v27 = vmul.f32 %v1023_v51, %v1809_v14  ;;  %v661_v55 = vor.u32 1.1754944e-38, %v660_v52 }
 0x171   :  { %v299_v17 = vsel %vm297_vm6, %v1941_v59, %v1598_v34  ;;  %v311_v12 = vsel %vm309_vm7, %v1942_v58, %v308_v1  ;;  %v647_v25 = vsel %vm644_vm14, %v646_v44, %v642_v20  ;;  %v463_v62 = vand.u32 2147483647, %v1809_v14  ;;  %820 = vmatmul.bf16.gmra.mxu2 %v719_v46 }
 0x172   :  { %v657_v34 = vsel %vm656_vm15, %v1021_v4, %v653_v0  ;;  %v678_v6 = vmul.f32 %v647_v25, %v1284_v5  ;;  %v456_v60 = vsub.f32 1.0, %v455_v27  ;;  %v414_v15 = vadd.f32 1e-06, %v299_v17  ;;  %v1943_v0 = vld [vmem:[#allocation14_spill] sm:$0xff] }
 0x173   :  { %v1025_v10 = vpop.eup %1024  ;;  %v662_v32 = vsel %vm659_vm0, %v661_v55, %v657_v34  ;;  %vm460_vm1 = vweird.f32 %v1023_v51  ;;  %v465_v57 = vand.u32 2147483648, %v1809_v14  ;;  %v1853_v22 = vadd.f32 1e-06, %v311_v12 }
 0x174   :  { %v679_v56 = vmul.f32 %v662_v32, %v1277_v2  ;;  %v695_v7 = vmul.f32 %v1592_v8, %v678_v6  ;;  %v457_v39 = vmul.f32 %v1023_v51, %v456_v60  ;;  %v470_v35 = vmul.f32 %v1025_v10, %v1819_v43  ;;  %v1882_v60 = vld [vmem:[#allocation9 + $0x2] ss:$0 sm:$0xff] }
 0x175   :  { %vm459_vm2 = vweird.f32 %v1809_v14  ;;  %vm464_vm3 = vcmp.eq.f32.partialorder %v463_v62, 8.507059e+37  ;;  %1026 = vrcp.f32 %v414_v15  ;;  %v466_v36 = vor.u32 1.1754944e-38, %v465_v57  ;;  %v1030_v32 = vld [vmem:[#allocation4 + $0x40] sm:$0xff] }
 0x176   :  { %v696_v5 = vmul.f32 %v1592_v8, %v679_v56  ;;  %v712_v47 = vadd.f32 %v1626_v18, %v695_v7  ;;  %v458_v30 = vadd.f32 %v1023_v51, %v457_v39  ;;  %v471_v31 = vsub.f32 1.0, %v470_v35  ;;  %vm461_vm4 = vmor %vm459_vm2, %vm460_vm1  ;;  %v1031_v56 = vld [vmem:[#allocation4 + $0x48] sm:$0xff]  ;;  %v1032_v35 = vld [vmem:[#allocation4 + $0x60] sm:$0xff] }
 0x177   :  { %v478_v45 = vand.u32 2147483647, %v1819_v43  ;;  %v480_v2 = vand.u32 2147483648, %v1819_v43  ;;  %1028 = vrcp.f32 %v1853_v22  ;;  %vm475_vm5 = vweird.f32 %v1025_v10 }
 0x178   :  { %v713_v33 = vadd.f32 %v1626_v18, %v696_v5  ;;  %v462_v40 = vsel %vm461_vm4, %v1023_v51, %v458_v30  ;;  %v472_v9 = vmul.f32 %v1025_v10, %v471_v31  ;;  %vm474_vm6 = vweird.f32 %v1819_v43  ;;  %v1033_v30 = vld [vmem:[#allocation4] sm:$0xff] }
 0x179   :  { %v467_v14 = vsel %vm464_vm3, %v466_v36, %v462_v40  ;;  %vm476_vm7 = vmor %vm474_vm6, %vm475_vm5  ;;  %v481_v4 = vor.u32 1.1754944e-38, %v480_v2  ;;  %vm479_vm8 = vcmp.eq.f32.partialorder %v478_v45, 8.507059e+37  ;;  %v523_v49 = vand.u32 2147483647, %v414_v15 }
 0x17a   :  { %v721_v23 = vpack.c.bf16 %v713_v33, %v712_v47  ;;  %v473_v29 = vadd.f32 %v1025_v10, %v472_v9  ;;  %v666_v37 = vmul.f32 %v467_v14, %v1289_v16  ;;  %v525_v43 = vand.u32 2147483648, %v414_v15  ;;  %v1034_v33 = vld [vmem:[#allocation4 + $0x68] sm:$0xff] }
 0x17b   :  { %v1027_v28 = vpop.eup %1026  ;;  %vm519_vm10 = vweird.f32 %v414_v15  ;;  %v538_v52 = vand.u32 2147483647, %v1853_v22  ;;  %v540_v3 = vand.u32 2147483648, %v1853_v22  ;;  %vm524_vm13 = vcmp.eq.f32.partialorder %v523_v49, 8.507059e+37 }
 0x17c   :  { %830 = vmatmul.bf16.gmra.mxu3 %v721_v23  ;;  %v477_v1 = vsel %vm476_vm7, %v1025_v10, %v473_v29  ;;  %v515_v42 = vmul.f32 %v1027_v28, %v414_v15  ;;  %v683_v48 = vmul.f32 %v1592_v8, %v666_v37  ;;  %vm520_vm9 = vweird.f32 %v1027_v28  ;;  %v1035_v23 = vld [vmem:[#allocation4 + $0x8] sm:$0xff] }
 0x17d   :  { %v1029_v41 = vpop.eup %1028  ;;  %v482_v53 = vsel %vm479_vm8, %v481_v4, %v477_v1  ;;  %vm521_vm12 = vmor %vm519_vm10, %vm520_vm9  ;;  %v526_v24 = vor.u32 1.1754944e-38, %v525_v43  ;;  %vm534_vm14 = vweird.f32 %v1853_v22  ;;  %v541_v58 = vor.u32 1.1754944e-38, %v540_v3 }
 0x17e   :  { %v667_v38 = vmul.f32 %v482_v53, %v1302_v21  ;;  %v516_v50 = vsub.f32 1.0, %v515_v42  ;;  %v530_v61 = vmul.f32 %v1029_v41, %v1853_v22  ;;  %v700_v63 = vadd.f32 %v1626_v18, %v683_v48 }
 0x17f   :  { %vm535_vm11 = vweird.f32 %v1029_v41  ;;  %vm539_vm0 = vcmp.eq.f32.partialorder %v538_v52, 8.507059e+37  ;;  %v1040_v52 = vld [vmem:[#allocation4 + $0x70] sm:$0xff] }
 0x180   :  { %v684_v16 = vmul.f32 %v1592_v8, %v667_v38  ;;  %v517_v13 = vmul.f32 %v1027_v28, %v516_v50  ;;  %v531_v11 = vsub.f32 1.0, %v530_v61  ;;  %vm536_vm15 = vmor %vm534_vm14, %vm535_vm11  ;;  %v1038_v50 = vld [vmem:[#allocation4 + $0x50] sm:$0xff] }
 0x182   :  { %v701_v54 = vadd.f32 %v1626_v18, %v684_v16  ;;  %v518_v21 = vadd.f32 %v1027_v28, %v517_v13  ;;  %v532_v26 = vmul.f32 %v1029_v41, %v531_v11  ;;  %v1039_v13 = vld [vmem:[#allocation4 + $0x58] sm:$0xff] }
 0x184   :  { %v715_v51 = vpack.c.bf16 %v701_v54, %v700_v63  ;;  %v522_v44 = vsel %vm521_vm12, %v1027_v28, %v518_v21  ;;  %v533_v59 = vadd.f32 %v1029_v41, %v532_v26  ;;  %v1036_v28 = vld [vmem:[#allocation4 + $0x20] sm:$0xff]  ;;  %v1041_v26 = vld [vmem:[#allocation4 + $0x10] sm:$0xff] }
 0x185   :  { %v527_v17 = vsel %vm524_vm13, %v526_v24, %v522_v44 }
 0x186   :  { %800 = vmatmul.bf16.gmra.mxu0 %v715_v51  ;;  %v537_v12 = vsel %vm536_vm15, %v1029_v41, %v533_v59  ;;  %v670_v46 = vmul.f32 %v527_v17, %v1295_v19  ;;  %v1037_v41 = vld [vmem:[#allocation4 + $0x28] sm:$0xff]  ;;  %v1042_v59 = vld [vmem:[#allocation4 + $0x78] sm:$0xff] }
 0x187   :  { %v542_v20 = vsel %vm539_vm0, %v541_v58, %v537_v12 }
 0x188   :  { %v671_v27 = vmul.f32 %v542_v20, %v1943_v0  ;;  %v687_v25 = vmul.f32 %v1592_v8, %v670_v46  ;;  %v1043_v0 = vld [vmem:[#allocation4 + $0x18] sm:$0xff] }
 0x18a   :  { %v688_v55 = vmul.f32 %v1592_v8, %v671_v27  ;;  %v704_v62 = vadd.f32 %v1626_v18, %v687_v25  ;;  %v1044_v25 = vld [vmem:[#allocation4 + $0x30] sm:$0xff] }
 0x18c   :  { %v705_v34 = vadd.f32 %v1626_v18, %v688_v55 }
 0x18e   :  { %v717_v6 = vpack.c.bf16 %v705_v34, %v704_v62 }
 0x190   :  { %810 = vmatmul.bf16.gmra.mxu1 %v717_v6  ;;  %v1045_v6 = vld [vmem:[#allocation4 + $0x38] sm:$0xff] }
 0x1ca   :  { %v816_v15 = vpop.f32.mrf.mxu2 }
 0x1cb   :  { %v817_v10 = vadd.f32 %v1882_v60, %v816_v15 }
 0x1cd   :  { %v844_v19 = vadd.f32 %v1030_v32, %v817_v10 }
 0x1cf   :  { %860 = vst [vmem:[#allocation10 + $0x40] sm:$0xff] %v844_v19 }
 0x1d2   :  { %v818_v57 = vpop.f32.mrf.mxu2 }
 0x1d3   :  { %v819_v22 = vadd.f32 %v1882_v60, %v818_v57 }
 0x1d5   :  { %v845_v7 = vadd.f32 %v1031_v56, %v819_v22 }
 0x1d7   :  { %861 = vst [vmem:[#allocation10 + $0x48] sm:$0xff] %v845_v7 }
 0x1d8   :  { %v826_v8 = vpop.f32.mrf.mxu3 }
 0x1d9   :  { %v827_v39 = vadd.f32 %v1882_v60, %v826_v8 }
 0x1da   :  { %v796_v18 = vpop.f32.mrf.mxu0 }
 0x1db   :  { %v848_v5 = vadd.f32 %v1032_v35, %v827_v39  ;;  %v797_v47 = vadd.f32 %v1882_v60, %v796_v18 }
 0x1dd   :  { %864 = vst [vmem:[#allocation10 + $0x60] sm:$0xff] %v848_v5  ;;  %v836_v31 = vadd.f32 %v1033_v30, %v797_v47 }
 0x1df   :  { %852 = vst [vmem:[#allocation10] sm:$0xff] %v836_v31 }
 0x1e0   :  { %v828_v36 = vpop.f32.mrf.mxu3 }
 0x1e1   :  { %v829_v45 = vadd.f32 %v1882_v60, %v828_v36 }
 0x1e2   :  { %v798_v2 = vpop.f32.mrf.mxu0 }
 0x1e3   :  { %v849_v40 = vadd.f32 %v1034_v33, %v829_v45  ;;  %v799_v9 = vadd.f32 %v1882_v60, %v798_v2 }
 0x1e5   :  { %865 = vst [vmem:[#allocation10 + $0x68] sm:$0xff] %v849_v40  ;;  %v837_v29 = vadd.f32 %v1035_v23, %v799_v9 }
 0x1e6   :  { %v806_v14 = vpop.f32.mrf.mxu1 }
 0x1e7   :  { %v807_v37 = vadd.f32 %v1882_v60, %v806_v14  ;;  %853 = vst [vmem:[#allocation10 + $0x8] sm:$0xff] %v837_v29 }
 0x1e9   :  { %v840_v4 = vadd.f32 %v1036_v28, %v807_v37 }
 0x1eb   :  { %856 = vst [vmem:[#allocation10 + $0x20] sm:$0xff] %v840_v4 }
 0x1ee   :  { %v808_v1 = vpop.f32.mrf.mxu1 }
 0x1ef   :  { %v809_v42 = vadd.f32 %v1882_v60, %v808_v1 }
 0x1f1   :  { %v841_v53 = vadd.f32 %v1037_v41, %v809_v42 }
 0x1f3   :  { %857 = vst [vmem:[#allocation10 + $0x28] sm:$0xff] %v841_v53 }
 0x1f4   :  { %v821_v48 = vpop.f32.mrf.mxu2 }
 0x1f5   :  { %v822_v38 = vadd.f32 %v1882_v60, %v821_v48 }
 0x1f7   :  { %v846_v61 = vadd.f32 %v1038_v50, %v822_v38 }
 0x1f9   :  { %862 = vst [vmem:[#allocation10 + $0x50] sm:$0xff] %v846_v61 }
 0x1fc   :  { %v823_v49 = vpop.f32.mrf.mxu2 }
 0x1fd   :  { %v824_v43 = vadd.f32 %v1882_v60, %v823_v49 }
 0x1ff   :  { %v831_v16 = vpop.f32.mrf.mxu3  ;;  %v847_v11 = vadd.f32 %v1039_v13, %v824_v43 }
 0x200   :  { %v832_v63 = vadd.f32 %v1882_v60, %v831_v16 }
 0x201   :  { %863 = vst [vmem:[#allocation10 + $0x58] sm:$0xff] %v847_v11 }
 0x202   :  { %v850_v3 = vadd.f32 %v1040_v52, %v832_v63 }
 0x203   :  { %v801_v54 = vpop.f32.mrf.mxu0 }
 0x204   :  { %866 = vst [vmem:[#allocation10 + $0x70] sm:$0xff] %v850_v3  ;;  %v802_v21 = vadd.f32 %v1882_v60, %v801_v54 }
 0x206   :  { %v838_v24 = vadd.f32 %v1041_v26, %v802_v21 }
 0x207   :  { %v833_v51 = vpop.f32.mrf.mxu3 }
 0x208   :  { %854 = vst [vmem:[#allocation10 + $0x10] sm:$0xff] %v838_v24  ;;  %v834_v44 = vadd.f32 %v1882_v60, %v833_v51 }
 0x20a   :  { %v851_v17 = vadd.f32 %v1042_v59, %v834_v44 }
 0x20b   :  { %v803_v58 = vpop.f32.mrf.mxu0 }
 0x20c   :  { %867 = vst [vmem:[#allocation10 + $0x78] sm:$0xff] %v851_v17  ;;  %v804_v12 = vadd.f32 %v1882_v60, %v803_v58 }
 0x20d   :  { %v811_v46 = vpop.f32.mrf.mxu1 }
 0x20e   :  { %v812_v20 = vadd.f32 %v1882_v60, %v811_v46  ;;  %v839_v27 = vadd.f32 %v1043_v0, %v804_v12 }
 0x210   :  { %v842_v55 = vadd.f32 %v1044_v25, %v812_v20  ;;  %855 = vst [vmem:[#allocation10 + $0x18] sm:$0xff] %v839_v27 }
 0x212   :  { %858 = vst [vmem:[#allocation10 + $0x30] sm:$0xff] %v842_v55 }
 0x215   :  { %v813_v62 = vpop.f32.mrf.mxu1 }
 0x216   :  { %v814_v34 = vadd.f32 %v1882_v60, %v813_v62 }
 0x218   :  { %v843_v15 = vadd.f32 %v1045_v6, %v814_v34 }
 0x21a   :  { %859 = vst [vmem:[#allocation10 + $0x38] sm:$0xff] %v843_v15 }
 0x21b   :  { %880 = dma.vmem_to_hbm [thread:$0]  %s873_s5, 2048, %s875_s8, [#allocation6], %s1152_s26, %s1152_s26, %s1153_s27  }
 0x21c   :  { %1146 = dma.done.wait [#allocation6], 2048  }
 0x21d   :  { %1147 = vsyncadd [#allocation6], 4294965248 }
 0x21e   :  { %885 = vsyncpa [#allocation5], 1 }
 0x21f   :  { %886 = vsyncpa [#allocation8], 1 }
 0x220   :  { %887 = vsyncpa [#allocation6], 1 }

</bundles_post_ra>
